<compile_context>
chip_gen: v7x
topology: tpu7x:2x2x1
jax: 0.10.0
libtpu: 0.0.40
codegen_flags: <defaults>
</compile_context>

<pallas_src>
import functools

import jax
import jax.numpy as jnp
from jax.experimental import pallas as pl
from jax.experimental.pallas import tpu as pltpu


# ---------------------------------------------------------------------------
# Pass 1: fused phi/g 1x1 conv + 2x2 max pool for one chunk of pooled rows.
# Inputs are the four pixels of every 2x2 pooling window as four (1, TK4, C)
# blocks; conv-then-maxpool == max over the four per-pixel conv outputs
# (adding the bias after the max is equivalent since it is constant/channel).
# ---------------------------------------------------------------------------
def _pool_project_kernel(x00_ref, x01_ref, x10_ref, x11_ref,
                         wpg_ref, bpg_ref,
                         phi_ref, g_ref, *, c8):
    pooled = None
    for xr in (x00_ref, x01_ref, x10_ref, x11_ref):          # static unroll
        xk = xr[0].astype(jnp.bfloat16)                      # (TK4, C)
        pk = jnp.dot(xk, wpg_ref[...],                       # fused phi|g weights
                     preferred_element_type=jnp.float32)     # (TK4, C/8 + C/2)
        pooled = pk if pooled is None else jnp.maximum(pooled, pk)
    pooled = pooled + bpg_ref[...]
    phi_ref[0] = pooled[:, :c8].astype(phi_ref.dtype)        # (TK4, C/8)
    g_ref[0] = pooled[:, c8:].astype(g_ref.dtype)            # (TK4, C/2)


# ---------------------------------------------------------------------------
# Pass 2: attention for one tile of TQ query pixels against all HW/4 pooled
# keys/values (resident per batch).
# ---------------------------------------------------------------------------
def _attention_kernel(x_ref, phi_ref, g_ref,
                      wt_ref, bt_ref, wa_ref, ba_ref, sigma_ref,
                      o_ref):
    x = x_ref[0]                                             # (TQ, C)
    x_bf = x.astype(jnp.bfloat16)

    # theta = conv_theta(x)                                  (TQ, C/8), f32 accum
    theta = jnp.dot(x_bf, wt_ref[...],
                    preferred_element_type=jnp.float32) + bt_ref[...]

    # scores = theta @ phi^T : contract on the shared C/8 axis directly,
    # no materialized transpose of phi.
    scores = jax.lax.dot_general(
        theta.astype(jnp.bfloat16), phi_ref[0],
        dimension_numbers=(((1,), (1,)), ((), ())),
        preferred_element_type=jnp.float32)                  # (TQ, HW/4)

    # numerically-stable softmax; normalization folded into the small output
    # (TQ, C/2) rather than the (TQ, HW/4) score tile.
    m = jnp.max(scores, axis=-1, keepdims=True)
    e = jnp.exp(scores - m)
    l = jnp.sum(e, axis=-1, keepdims=True)                   # (TQ, 1)

    attn_g = jnp.dot(e.astype(jnp.bfloat16), g_ref[0],
                     preferred_element_type=jnp.float32)     # (TQ, C/2), unnormalized
    attn_g = attn_g * pl.reciprocal(l, approx=True)

    out_att = jnp.dot(attn_g.astype(jnp.bfloat16), wa_ref[...],
                      preferred_element_type=jnp.float32) + ba_ref[...]   # (TQ, C)

    sigma = sigma_ref[0]                                     # scalar from SMEM
    o_ref[0] = (x.astype(jnp.float32) + sigma * out_att).astype(o_ref.dtype)


def _pick_tile(n, target, align=8):
    """Largest multiple of `align` dividing n that is <= target, else n."""
    best = None
    t = align
    limit = min(n, max(target, align))
    while t <= limit:
        if n % t == 0:
            best = t
        t += align
    return best if best is not None else n


def self_attention_pallas(x_nchw, params, *,
                          q_tile_target=1024, k_tile_target=1024,
                          score_tile_budget_bytes=8 * 1024 * 1024):
    B, C, H, W = x_nchw.shape
    assert H % 2 == 0 and W % 2 == 0 and C % 8 == 0
    HW, HW4 = H * W, (H * W) // 4
    C8, C2 = C // 8, C // 2
    CPG = C8 + C2

    in_dtype = x_nchw.dtype
    key_dtype = jnp.bfloat16       # pooled phi/g storage == matmul operand dtype

    # NCHW -> channel-last, pixel-row-major (C is the lane-dense minor dim).
    # NOTE: at real SAGAN sizes C >= 128 so output stores are lane-dense; the
    # tiny-C test case below is the known pathological (masked-store) shape.
    x_nhwc = jnp.transpose(x_nchw, (0, 2, 3, 1))             # (B, H, W, C)
    x_flat = x_nhwc.reshape(B, HW, C)                        # (B, HW, C)
    # The four pixels of every 2x2 pooling window, each as (B, HW/4, C),
    # in pooled-row-major order (matches PyTorch's max_pool2d + view).
    xp = [x_nhwc[:, a::2, b::2, :].reshape(B, HW4, C)
          for a in (0, 1) for b in (0, 1)]

    # 1x1-conv weights, pre-transposed to (Cin, Cout); phi & g fused into one
    # wide matmul for MXU lane occupancy. Weights in bf16, biases in f32.
    wpg = jnp.concatenate([params["wp"].T, params["wg"].T],
                          axis=1).astype(jnp.bfloat16)       # (C, C/8 + C/2)
    bpg = jnp.concatenate([params["bp"], params["bg"]]
                          ).reshape(1, CPG).astype(jnp.float32)
    wtT = params["wt"].T.astype(jnp.bfloat16)                # (C, C/8)
    bt = params["bt"].reshape(1, C8).astype(jnp.float32)
    waT = params["wa"].T.astype(jnp.bfloat16)                # (C/2, C)
    ba = params["ba"].reshape(1, C).astype(jnp.float32)
    sigma = jnp.asarray(params["sigma"], jnp.float32).reshape(1)

    full = lambda b, k: (0, 0)
    cparams = pltpu.CompilerParams(
        dimension_semantics=("parallel", "parallel"),
        vmem_limit_bytes=48 * 1024 * 1024)

    # ------------------ pass 1: project + pool (keys / values) --------------
    # Biggest tile that divides HW/4 and stays under the target; small inputs
    # run in a single grid step per batch.
    tk4 = _pick_tile(HW4, k_tile_target)
    nk = HW4 // tk4
    pool_kernel = functools.partial(_pool_project_kernel, c8=C8)
    phi_p, g_p = pl.pallas_call(
        pool_kernel,
        out_shape=(jax.ShapeDtypeStruct((B, HW4, C8), key_dtype),
                   jax.ShapeDtypeStruct((B, HW4, C2), key_dtype)),
        grid_spec=pltpu.PrefetchScalarGridSpec(
            num_scalar_prefetch=0,
            grid=(B, nk),
            in_specs=[pl.BlockSpec((1, tk4, C), lambda b, k: (b, k, 0))] * 4
                     + [pl.BlockSpec((C, CPG), full),
                        pl.BlockSpec((1, CPG), full)],
            out_specs=(pl.BlockSpec((1, tk4, C8), lambda b, k: (b, k, 0)),
                       pl.BlockSpec((1, tk4, C2), lambda b, k: (b, k, 0))),
        ),
        compiler_params=cparams,
    )(*xp, wpg, bpg)

    # ------------------ pass 2: attention, tiled over query rows ------------
    # Cap the query tile so the per-step (TQ, HW/4) f32 score tile fits the
    # VMEM budget, then take the largest divisor of HW under that cap.
    tq_cap = max(8, (score_tile_budget_bytes // max(1, HW4 * 4)) // 8 * 8)
    tq = _pick_tile(HW, min(q_tile_target, tq_cap))
    nq = HW // tq
    out_flat = pl.pallas_call(
        _attention_kernel,
        out_shape=jax.ShapeDtypeStruct((B, HW, C), in_dtype),
        grid_spec=pltpu.PrefetchScalarGridSpec(
            num_scalar_prefetch=0,
            grid=(B, nq),
            in_specs=[
                pl.BlockSpec((1, tq, C), lambda b, q: (b, q, 0)),    # x query tile
                pl.BlockSpec((1, HW4, C8), lambda b, q: (b, 0, 0)),  # pooled phi (resident per batch)
                pl.BlockSpec((1, HW4, C2), lambda b, q: (b, 0, 0)),  # pooled g
                pl.BlockSpec((C, C8), full),                         # wt^T
                pl.BlockSpec((1, C8), full),                         # bt
                pl.BlockSpec((C2, C), full),                         # wa^T
                pl.BlockSpec((1, C), full),                          # ba
                pl.BlockSpec(memory_space=pltpu.MemorySpace.SMEM),   # sigma scalar
            ],
            out_specs=pl.BlockSpec((1, tq, C), lambda b, q: (b, q, 0)),
        ),
        compiler_params=cparams,
    )(x_flat, phi_p, g_p, wtT, bt, waT, ba, sigma)

    return jnp.transpose(out_flat.reshape(B, H, W, C), (0, 3, 1, 2))  # -> NCHW


# ---------------------------------------------------------------------------
# Pure-JAX reference mirroring the PyTorch forward (NCHW, f32 throughout).
# ---------------------------------------------------------------------------
def self_attention_ref(x, params):
    B, C, H, W = x.shape

    def conv1x1(t, w, b):
        return jnp.einsum("bchw,oc->bohw", t, w) + b[None, :, None, None]

    theta = conv1x1(x, params["wt"], params["bt"])
    theta = theta.reshape(B, C // 8, H * W).transpose(0, 2, 1)        # (B, HW, C/8)
    phi = conv1x1(x, params["wp"], params["bp"])
    phi = phi.reshape(B, C // 8, H // 2, 2, W // 2, 2).max(axis=(3, 5))
    phi = phi.reshape(B, C // 8, H * W // 4)                          # (B, C/8, HW/4)
    attn = jax.nn.softmax(jnp.einsum("bqc,bck->bqk", theta, phi), axis=-1)
    g = conv1x1(x, params["wg"], params["bg"])
    g = g.reshape(B, C // 2, H // 2, 2, W // 2, 2).max(axis=(3, 5))
    g = g.reshape(B, C // 2, H * W // 4).transpose(0, 2, 1)           # (B, HW/4, C/2)
    attn_g = jnp.einsum("bqk,bkc->bqc", attn, g).transpose(0, 2, 1)
    attn_g = attn_g.reshape(B, C // 2, H, W)
    attn_g = conv1x1(attn_g, params["wa"], params["ba"])
    return x + params["sigma"] * attn_g


def init_params(key, dims):
    ks = jax.random.split(key, 8)
    s = 0.1
    return {
        "wt": s * jax.random.normal(ks[0], (dims // 8, dims), jnp.float32),
        "bt": s * jax.random.normal(ks[1], (dims // 8,), jnp.float32),
        "wp": s * jax.random.normal(ks[2], (dims // 8, dims), jnp.float32),
        "bp": s * jax.random.normal(ks[3], (dims // 8,), jnp.float32),
        "wg": s * jax.random.normal(ks[4], (dims // 2, dims), jnp.float32),
        "bg": s * jax.random.normal(ks[5], (dims // 2,), jnp.float32),
        "wa": s * jax.random.normal(ks[6], (dims, dims // 2), jnp.float32),
        "ba": s * jax.random.normal(ks[7], (dims,), jnp.float32),
        # PyTorch inits sigma_ratio to 0 (output == input); use a nonzero value
        # so the attention path is actually exercised by the test.
        "sigma": jnp.array(0.5, jnp.float32),
    }


if __name__ == "__main__":
    key = jax.random.PRNGKey(0)
    k_x, k_p = jax.random.split(key)

    B, C, H, W = 2, 32, 16, 16
    x = jax.random.normal(k_x, (B, C, H, W), jnp.float32)
    params = init_params(k_p, C)

    out = jax.block_until_ready(self_attention_pallas(x, params))
    ref = jax.block_until_ready(self_attention_ref(x, params))

    assert out.shape == (B, C, H, W)
    max_err = float(jnp.max(jnp.abs(out - ref)))
    # bf16 matmul operands (f32 accumulation) vs the f32 reference.
    assert jnp.allclose(out, ref, atol=2e-2, rtol=2e-2), max_err
    print("KERNEL_OK")
</pallas_src>

<mosaic_0001>
module attributes {stable_mosaic.version = 11 : i64} {
  func.func @_pool_project_kernel(%arg0: i32, %arg1: i32, %arg2: memref<1x64x32xf32, #tpu.memory_space<vmem>>, %arg3: memref<1x64x32xf32, #tpu.memory_space<vmem>>, %arg4: memref<1x64x32xf32, #tpu.memory_space<vmem>>, %arg5: memref<1x64x32xf32, #tpu.memory_space<vmem>>, %arg6: memref<32x20xbf16, #tpu.memory_space<vmem>>, %arg7: memref<1x20xf32, #tpu.memory_space<vmem>>, %arg8: memref<1x64x4xbf16, #tpu.memory_space<vmem>>, %arg9: memref<1x64x16xbf16, #tpu.memory_space<vmem>>) attributes {dimension_semantics = [#tpu.dimension_semantics<parallel>, #tpu.dimension_semantics<parallel>], iteration_bounds = array<i64: 2, 1>, scalar_prefetch = 0 : i64, scratch_operands = 0 : i64, tpu.core_type = #tpu.core_type<tc>, window_params = [{transform_indices = @transform_0, window_bounds = array<i64: 1, 64, 32>}, {transform_indices = @transform_1, window_bounds = array<i64: 1, 64, 32>}, {transform_indices = @transform_2, window_bounds = array<i64: 1, 64, 32>}, {transform_indices = @transform_3, window_bounds = array<i64: 1, 64, 32>}, {pipeline_mode = #tpu.pipeline_mode<synchronous>, transform_indices = @transform_4, window_bounds = array<i64: 32, 20>}, {pipeline_mode = #tpu.pipeline_mode<synchronous>, transform_indices = @transform_5, window_bounds = array<i64: 1, 20>}, {transform_indices = @transform_6, window_bounds = array<i64: 1, 64, 4>}, {transform_indices = @transform_7, window_bounds = array<i64: 1, 64, 16>}]} {
    %c0 = arith.constant 0 : index
    %c0_0 = arith.constant 0 : index
    %c0_1 = arith.constant 0 : index
    %0 = vector.load %arg2[%c0, %c0_0, %c0_1] : memref<1x64x32xf32, #tpu.memory_space<vmem>>, vector<1x64x32xf32>
    %1 = vector.shape_cast %0 : vector<1x64x32xf32> to vector<64x32xf32>
    %2 = arith.truncf %1 : vector<64x32xf32> to vector<64x32xbf16>
    %c0_2 = arith.constant 0 : index
    %c0_3 = arith.constant 0 : index
    %3 = vector.load %arg6[%c0_2, %c0_3] : memref<32x20xbf16, #tpu.memory_space<vmem>>, vector<32x20xbf16>
    %cst = arith.constant dense<0.000000e+00> : vector<64x20xf32>
    %4 = tpu.matmul %2, %3, %cst {dimension_numbers = #tpu.dot_dimension_numbers<[1], [0], [0], [1], [0, 0, 1, 1], [], []>} : vector<64x32xbf16>, vector<32x20xbf16>, vector<64x20xf32> -> vector<64x20xf32>
    %c0_4 = arith.constant 0 : index
    %c0_5 = arith.constant 0 : index
    %c0_6 = arith.constant 0 : index
    %5 = vector.load %arg3[%c0_4, %c0_5, %c0_6] : memref<1x64x32xf32, #tpu.memory_space<vmem>>, vector<1x64x32xf32>
    %6 = vector.shape_cast %5 : vector<1x64x32xf32> to vector<64x32xf32>
    %7 = arith.truncf %6 : vector<64x32xf32> to vector<64x32xbf16>
    %c0_7 = arith.constant 0 : index
    %c0_8 = arith.constant 0 : index
    %8 = vector.load %arg6[%c0_7, %c0_8] : memref<32x20xbf16, #tpu.memory_space<vmem>>, vector<32x20xbf16>
    %cst_9 = arith.constant dense<0.000000e+00> : vector<64x20xf32>
    %9 = tpu.matmul %7, %8, %cst_9 {dimension_numbers = #tpu.dot_dimension_numbers<[1], [0], [0], [1], [0, 0, 1, 1], [], []>} : vector<64x32xbf16>, vector<32x20xbf16>, vector<64x20xf32> -> vector<64x20xf32>
    %10 = arith.maximumf %4, %9 : vector<64x20xf32>
    %c0_10 = arith.constant 0 : index
    %c0_11 = arith.constant 0 : index
    %c0_12 = arith.constant 0 : index
    %11 = vector.load %arg4[%c0_10, %c0_11, %c0_12] : memref<1x64x32xf32, #tpu.memory_space<vmem>>, vector<1x64x32xf32>
    %12 = vector.shape_cast %11 : vector<1x64x32xf32> to vector<64x32xf32>
    %13 = arith.truncf %12 : vector<64x32xf32> to vector<64x32xbf16>
    %c0_13 = arith.constant 0 : index
    %c0_14 = arith.constant 0 : index
    %14 = vector.load %arg6[%c0_13, %c0_14] : memref<32x20xbf16, #tpu.memory_space<vmem>>, vector<32x20xbf16>
    %cst_15 = arith.constant dense<0.000000e+00> : vector<64x20xf32>
    %15 = tpu.matmul %13, %14, %cst_15 {dimension_numbers = #tpu.dot_dimension_numbers<[1], [0], [0], [1], [0, 0, 1, 1], [], []>} : vector<64x32xbf16>, vector<32x20xbf16>, vector<64x20xf32> -> vector<64x20xf32>
    %16 = arith.maximumf %10, %15 : vector<64x20xf32>
    %c0_16 = arith.constant 0 : index
    %c0_17 = arith.constant 0 : index
    %c0_18 = arith.constant 0 : index
    %17 = vector.load %arg5[%c0_16, %c0_17, %c0_18] : memref<1x64x32xf32, #tpu.memory_space<vmem>>, vector<1x64x32xf32>
    %18 = vector.shape_cast %17 : vector<1x64x32xf32> to vector<64x32xf32>
    %19 = arith.truncf %18 : vector<64x32xf32> to vector<64x32xbf16>
    %c0_19 = arith.constant 0 : index
    %c0_20 = arith.constant 0 : index
    %20 = vector.load %arg6[%c0_19, %c0_20] : memref<32x20xbf16, #tpu.memory_space<vmem>>, vector<32x20xbf16>
    %cst_21 = arith.constant dense<0.000000e+00> : vector<64x20xf32>
    %21 = tpu.matmul %19, %20, %cst_21 {dimension_numbers = #tpu.dot_dimension_numbers<[1], [0], [0], [1], [0, 0, 1, 1], [], []>} : vector<64x32xbf16>, vector<32x20xbf16>, vector<64x20xf32> -> vector<64x20xf32>
    %22 = arith.maximumf %16, %21 : vector<64x20xf32>
    %c0_22 = arith.constant 0 : index
    %c0_23 = arith.constant 0 : index
    %23 = vector.load %arg7[%c0_22, %c0_23] : memref<1x20xf32, #tpu.memory_space<vmem>>, vector<1x20xf32>
    %24 = vector.broadcast %23 : vector<1x20xf32> to vector<64x20xf32>
    %25 = arith.addf %22, %24 : vector<64x20xf32>
    %26 = vector.extract_strided_slice %25 {offsets = [0, 0], sizes = [64, 4], strides = [1, 1]} : vector<64x20xf32> to vector<64x4xf32>
    %27 = arith.truncf %26 : vector<64x4xf32> to vector<64x4xbf16>
    %c0_24 = arith.constant 0 : index
    %c0_25 = arith.constant 0 : index
    %c0_26 = arith.constant 0 : index
    %28 = vector.load %arg8[%c0_24, %c0_25, %c0_26] : memref<1x64x4xbf16, #tpu.memory_space<vmem>>, vector<1x64x4xbf16>
    %29 = vector.shape_cast %28 : vector<1x64x4xbf16> to vector<64x4xbf16>
    %30 = vector.shape_cast %27 : vector<64x4xbf16> to vector<1x64x4xbf16>
    tpu.vector_store %arg8[%c0_24, %c0_25, %c0_26], %30 {strides = array<i32>} : memref<1x64x4xbf16, #tpu.memory_space<vmem>>, vector<1x64x4xbf16>,
    %31 = vector.extract_strided_slice %25 {offsets = [0, 4], sizes = [64, 16], strides = [1, 1]} : vector<64x20xf32> to vector<64x16xf32>
    %32 = arith.truncf %31 : vector<64x16xf32> to vector<64x16xbf16>
    %c0_27 = arith.constant 0 : index
    %c0_28 = arith.constant 0 : index
    %c0_29 = arith.constant 0 : index
    %33 = vector.load %arg9[%c0_27, %c0_28, %c0_29] : memref<1x64x16xbf16, #tpu.memory_space<vmem>>, vector<1x64x16xbf16>
    %34 = vector.shape_cast %33 : vector<1x64x16xbf16> to vector<64x16xbf16>
    %35 = vector.shape_cast %32 : vector<64x16xbf16> to vector<1x64x16xbf16>
    tpu.vector_store %arg9[%c0_27, %c0_28, %c0_29], %35 {strides = array<i32>} : memref<1x64x16xbf16, #tpu.memory_space<vmem>>, vector<1x64x16xbf16>,
    return
  }
  func.func @transform_0(%arg0: i32, %arg1: i32) -> (i32, i32, i32) {
    %c0_i32 = arith.constant 0 : i32
    %c0_i32_0 = arith.constant 0 : i32
    return %arg0, %arg1, %c0_i32 : i32, i32, i32
  }
  func.func @transform_1(%arg0: i32, %arg1: i32) -> (i32, i32, i32) {
    %c0_i32 = arith.constant 0 : i32
    %c0_i32_0 = arith.constant 0 : i32
    return %arg0, %arg1, %c0_i32 : i32, i32, i32
  }
  func.func @transform_2(%arg0: i32, %arg1: i32) -> (i32, i32, i32) {
    %c0_i32 = arith.constant 0 : i32
    %c0_i32_0 = arith.constant 0 : i32
    return %arg0, %arg1, %c0_i32 : i32, i32, i32
  }
  func.func @transform_3(%arg0: i32, %arg1: i32) -> (i32, i32, i32) {
    %c0_i32 = arith.constant 0 : i32
    %c0_i32_0 = arith.constant 0 : i32
    return %arg0, %arg1, %c0_i32 : i32, i32, i32
  }
  func.func @transform_4(%arg0: i32, %arg1: i32) -> (i32, i32) {
    %c0_i32 = arith.constant 0 : i32
    %c0_i32_0 = arith.constant 0 : i32
    %c0_i32_1 = arith.constant 0 : i32
    return %c0_i32, %c0_i32_0 : i32, i32
  }
  func.func @transform_5(%arg0: i32, %arg1: i32) -> (i32, i32) {
    %c0_i32 = arith.constant 0 : i32
    %c0_i32_0 = arith.constant 0 : i32
    %c0_i32_1 = arith.constant 0 : i32
    return %c0_i32, %c0_i32_0 : i32, i32
  }
  func.func @transform_6(%arg0: i32, %arg1: i32) -> (i32, i32, i32) {
    %c0_i32 = arith.constant 0 : i32
    %c0_i32_0 = arith.constant 0 : i32
    return %arg0, %arg1, %c0_i32 : i32, i32, i32
  }
  func.func @transform_7(%arg0: i32, %arg1: i32) -> (i32, i32, i32) {
    %c0_i32 = arith.constant 0 : i32
    %c0_i32_0 = arith.constant 0 : i32
    return %arg0, %arg1, %c0_i32 : i32, i32, i32
  }
}

</mosaic_0001>

<bundles_post_ra>
// kernel: tpu_custom_call.1
= control target key start
LH: loop header
LB: loop body
LE: loop exit
PB: predicated region body
PF: predicated region fallthrough
CT: control target
= control target key end

     0   :  { %s1352_s24 = smov 0   ;;  %s1354_s25 = smov 0   ;;  %s1510_s0 = inlined_call_operand.vmem [shape: f32[2,64,32], index: 0, kind: input, shape index: {}]   ;;  %s1511_s1 = inlined_call_operand.vmem [shape: f32[2,64,32], index: 1, kind: input, shape index: {}]   ;;  %s1512_s2 = inlined_call_operand.vmem [shape: f32[2,64,32], index: 2, kind: input, shape index: {}]   ;;  %s1513_s3 = inlined_call_operand.vmem [shape: f32[2,64,32], index: 3, kind: input, shape index: {}]   ;;  %s1514_s4 = inlined_call_operand.vmem [shape: bf16[32,20], index: 4, kind: input, shape index: {}]   ;;  %s1515_s5 = inlined_call_operand.vmem [shape: f32[1,20], index: 5, kind: input, shape index: {}]   ;;  %s1516_s6 = inlined_call_operand.vmem [shape: bf16[2,64,4], index: 6, kind: output, shape index: {0}]   ;;  %s1517_s7 = inlined_call_operand.vmem [shape: bf16[2,64,16], index: 7, kind: output, shape index: {1}]  }
   0x1   :  { %s1356_s26 = smov 0  }
   0x2 LB: > { %s30_s27 = sadd.s32 1, %s1305_s25  ;;  %p1132_p0 = scmp.ge.s32.totalorder %s1309_s26, 1  ;;  %s1309_s26 = sphi %s1356_s26, %s18_s26   ;;  %s1305_s25 = sphi %s1354_s25, %s1519_s25   ;;  %s1301_s24 = sphi %s1352_s24, %s1518_s24  }
   0x3   : > { %p32_p1 = scmp.ge.s32.totalorder %s30_s27, 2  ;;  %p314_p2 = scmp.lt.s32.totalorder %s1309_s26, 3 }
   0x5   : > { %s1521_s27 = smov (%p32_p1, %s30_s27), 0  ;;  %p315_p3 = pnand %p1132_p0, %p314_p2 }
   0x6   : > { %v1285_v0 = vld [vmem:[%s1514_s4] sm:$0xff] (!%p315_p3)   ;;  %p391_p4 = scmp.lt.s32.totalorder (!%p315_p3), %s1301_s24, 1  ;;  %v1286_v1 = vld [vmem:[%s1514_s4 + $0x8] sm:$0xff] (!%p315_p3)   ;;  %vm479_vm0 = vcmask (!%p315_p3), 261120   ;;  %vm895_vm1 = vcmask (!%p315_p3), 27648   ;;  %vm928_vm2 = vcmask (!%p315_p3), 125952  }
   0x7   : > { %318 = sbr.rel (%p315_p3) target bundleno = 388 (0x184), region = 44  ;;  %1212 = vmatprep.subr.bf16.mxu0 (!%p315_p3), %v1285_v0  ;;  %1224 = vmatprep.subr.bf16.mxu1 (!%p315_p3), %v1285_v0 }
   0x8   : > { %1213 = vmatpush3.bf16.msra.mxu0 (!%p315_p3), %v1285_v0  ;;  %1225 = vmatpush3.bf16.msra.mxu1 (!%p315_p3), %v1285_v0 }
   0x9   : > { %1214 = vmatprep.subr.bf16.mxu0 (!%p315_p3), %v1286_v1  ;;  %1226 = vmatprep.subr.bf16.mxu1 (!%p315_p3), %v1286_v1 }
   0xc   : > { %1215 = vmatpush3.bf16.msra.mxu0 (!%p315_p3), %v1286_v1  ;;  %1227 = vmatpush3.bf16.msra.mxu1 (!%p315_p3), %v1286_v1 }
   0xd   : > { %1236 = vmatprep.subr.bf16.mxu0 (!%p315_p3), %v1285_v0  ;;  %1248 = vmatprep.subr.bf16.mxu1 (!%p315_p3), %v1285_v0 }
   0xe   : > { %s1523_s24 = smov (!%p391_p4, %s1301_s24), 1 }
   0xf   : > { %s1379_s9 = sshll.u32 %s1523_s24, 6  ;;  %s1178_s28 = sshll.u32 %s1523_s24, 5 }
  0x10   : > { %s1385_s12 = scalar_lea.vmem %s1510_s0, %s1379_s9  ;;  %s1391_s15 = scalar_lea.vmem %s1511_s1, %s1379_s9 }
  0x11   : > { %v451_v2 = vld [vmem:[%s1385_s12] sm:$0xff]  ;;  %v452_v3 = vld [vmem:[%s1385_s12 + $0x8] sm:$0xff]  ;;  %v453_v7 = vld [vmem:[%s1385_s12 + $0x10] sm:$0xff]  ;;  %s1410_s18 = scalar_lea.vmem %s1512_s2, %s1379_s9  ;;  %s1418_s21 = scalar_lea.vmem %s1513_s3, %s1379_s9 }
  0x12   : > { %v557_v4 = vld [vmem:[%s1391_s15] sm:$0xff]  ;;  %v459_v5 = vpack.c.bf16 %v452_v3, %v451_v2  ;;  %v558_v6 = vld [vmem:[%s1391_s15 + $0x8] sm:$0xff]  ;;  %v454_v8 = vld [vmem:[%s1385_s12 + $0x18] sm:$0xff]  ;;  %s1462_s8 = scalar_lea.vmem %s1516_s6, %s1178_s28  ;;  %s1311_s9 = smov 124  }
  0x13   : > { %v565_v9 = vpack.c.bf16 %v558_v6, %v557_v4  ;;  %v460_v10 = vpack.c.bf16 %v454_v8, %v453_v7  ;;  %v559_v11 = vld [vmem:[%s1391_s15 + $0x10] sm:$0xff]  ;;  %v560_v12 = vld [vmem:[%s1391_s15 + $0x18] sm:$0xff]  ;;  %v455_v13 = vld [vmem:[%s1385_s12 + $0x20] sm:$0xff] }
  0x14   : > { %1216 = vmatprep.mubr.msk.bf16.mxu0 %vm479_vm0, %v459_v5  ;;  %v566_v14 = vpack.c.bf16 %v560_v12, %v559_v11  ;;  %v456_v15 = vld [vmem:[%s1385_s12 + $0x28] sm:$0xff]  ;;  %v561_v16 = vld [vmem:[%s1391_s15 + $0x20] sm:$0xff]  ;;  %v457_v20 = vld [vmem:[%s1385_s12 + $0x30] sm:$0xff] }
  0x15   : > { %v562_v17 = vld [vmem:[%s1391_s15 + $0x28] sm:$0xff]  ;;  %1228 = vmatprep.mubr.msk.bf16.mxu1 %vm479_vm0, %v565_v9  ;;  %1217 = vmatmul.mubr.msk.bf16.vlgmr.msra.gmra.mrb[0].mxu0 %vm479_vm0, %v460_v10  ;;  %v461_v18 = vpack.c.bf16 %v456_v15, %v455_v13  ;;  %v458_v21 = vld [vmem:[%s1385_s12 + $0x38] sm:$0xff]  ;;  %v563_v22 = vld [vmem:[%s1391_s15 + $0x30] sm:$0xff]  ;;  %s448_s12 = scalar_lea.vmem %s1517_s7, %s1178_s28 }
  0x16   : > { %v567_v19 = vpack.c.bf16 %v562_v17, %v561_v16  ;;  %1229 = vmatmul.mubr.msk.bf16.vlgmr.msra.gmra.mrb[0].mxu1 %vm479_vm0, %v566_v14  ;;  %1237 = vmatpush3.bf16.msra.mxu0 %v1285_v0  ;;  %v564_v23 = vld [vmem:[%s1391_s15 + $0x38] sm:$0xff]  ;;  %v654_v24 = vld [vmem:[%s1410_s18] sm:$0xff]  ;;  %v655_v25 = vld [vmem:[%s1410_s18 + $0x8] sm:$0xff]  ;;  %v462_v28 = vpack.c.bf16 %v458_v21, %v457_v20 }
  0x17   : > { %1249 = vmatpush3.bf16.msra.mxu1 %v1285_v0  ;;  %1220 = vmatprep.mubr.msk.bf16.mxu0 %vm479_vm0, %v461_v18  ;;  %v751_v26 = vld [vmem:[%s1418_s21] sm:$0xff]  ;;  %v752_v27 = vld [vmem:[%s1418_s21 + $0x8] sm:$0xff]  ;;  %v568_v29 = vpack.c.bf16 %v564_v23, %v563_v22  ;;  %v662_v30 = vpack.c.bf16 %v655_v25, %v654_v24  ;;  %v656_v32 = vld [vmem:[%s1410_s18 + $0x10] sm:$0xff] }
  0x18   : > { %1232 = vmatprep.mubr.msk.bf16.mxu1 %vm479_vm0, %v567_v19  ;;  %1238 = vmatprep.subr.bf16.mxu0 %v1286_v1  ;;  %v759_v31 = vpack.c.bf16 %v752_v27, %v751_v26  ;;  %v657_v33 = vld [vmem:[%s1410_s18 + $0x18] sm:$0xff]  ;;  %v753_v34 = vld [vmem:[%s1418_s21 + $0x10] sm:$0xff]  ;;  %v658_v36 = vld [vmem:[%s1410_s18 + $0x20] sm:$0xff] }
  0x19   : > { %1250 = vmatprep.subr.bf16.mxu1 %v1286_v1  ;;  %v754_v35 = vld [vmem:[%s1418_s21 + $0x18] sm:$0xff]  ;;  %v659_v37 = vld [vmem:[%s1410_s18 + $0x28] sm:$0xff]  ;;  %v755_v38 = vld [vmem:[%s1418_s21 + $0x20] sm:$0xff]  ;;  %v663_v40 = vpack.c.bf16 %v657_v33, %v656_v32 }
  0x1a   : > { %1239 = vmatpush3.bf16.msra.mxu0 %v1286_v1  ;;  %v756_v39 = vld [vmem:[%s1418_s21 + $0x28] sm:$0xff]  ;;  %v760_v41 = vpack.c.bf16 %v754_v35, %v753_v34  ;;  %v664_v42 = vpack.c.bf16 %v659_v37, %v658_v36  ;;  %v660_v44 = vld [vmem:[%s1410_s18 + $0x30] sm:$0xff]  ;;  %v661_v45 = vld [vmem:[%s1410_s18 + $0x38] sm:$0xff] }
  0x1b   : > { %1251 = vmatpush3.bf16.msra.mxu1 %v1286_v1  ;;  %v761_v43 = vpack.c.bf16 %v756_v39, %v755_v38  ;;  %v757_v46 = vld [vmem:[%s1418_s21 + $0x30] sm:$0xff]  ;;  %v758_v47 = vld [vmem:[%s1418_s21 + $0x38] sm:$0xff]  ;;  %v665_v48 = vpack.c.bf16 %v661_v45, %v660_v44  ;;  %v1163_v17 = vld [vmem:[%s1515_s5] ss:$0 sm:$0xff] }
  0x1c   : > { %v762_v49 = vpack.c.bf16 %v758_v47, %v757_v46 }
  0x1d   : > { %1221 = vmatmul.mubr.msk.bf16.gmra.mrb[4].mxu0 %vm479_vm0, %v462_v28 }
  0x1e   : > { %1233 = vmatmul.mubr.msk.bf16.gmra.mrb[4].mxu1 %vm479_vm0, %v568_v29  ;;  %1240 = vmatprep.mubr.msk.bf16.mxu0 %vm479_vm0, %v662_v30 }
  0x1f   : > { %1252 = vmatprep.mubr.msk.bf16.mxu1 %vm479_vm0, %v759_v31 }
  0x25   : > { %1241 = vmatmul.mubr.msk.bf16.vlgmr.msra.gmra.mrb[8].mxu0 %vm479_vm0, %v663_v40 }
  0x26   : > { %1253 = vmatmul.mubr.msk.bf16.vlgmr.msra.gmra.mrb[8].mxu1 %vm479_vm0, %v760_v41  ;;  %1244 = vmatprep.mubr.msk.bf16.mxu0 %vm479_vm0, %v664_v42 }
  0x27   : > { %1256 = vmatprep.mubr.msk.bf16.mxu1 %vm479_vm0, %v761_v43 }
  0x2d   : > { %1245 = vmatmul.mubr.msk.bf16.gmra.mrb[12].mxu0 %vm479_vm0, %v665_v48 }
  0x2e   : > { %1257 = vmatmul.mubr.msk.bf16.gmra.mrb[12].mxu1 %vm479_vm0, %v762_v49 }
  0xe8   : > { %v1218_v50 = vpop.f32.mrb[0].mxu0 }
  0xe9   : > { %v1230_v51 = vpop.f32.mrb[0].mxu1  ;;  %v526_v52 = vpop.f32.mrb[1].mxu0 }
  0xea   : > { %v648_v53 = vmax.f32 %v1218_v50, %v1230_v51  ;;  %v615_v54 = vpop.f32.mrb[1].mxu1  ;;  %v1219_v55 = vpop.f32.mrb[2].mxu0 }
  0xeb   : > { %v646_v56 = vmax.f32 %v526_v52, %v615_v54  ;;  %v1231_v57 = vpop.f32.mrb[2].mxu1  ;;  %v529_v58 = vpop.f32.mrb[3].mxu0 }
  0xec   : > { %v649_v59 = vmax.f32 %v1219_v55, %v1231_v57  ;;  %v618_v60 = vpop.f32.mrb[3].mxu1 }
  0xed   : > { %v647_v61 = vmax.f32 %v529_v58, %v618_v60 }
  0xf0   : > { %v1222_v62 = vpop.f32.mrb[4].mxu0 }
  0xf1   : > { %v1234_v63 = vpop.f32.mrb[4].mxu1  ;;  %v542_v0 = vpop.f32.mrb[5].mxu0 }
  0xf2   : > { %v652_v1 = vmax.f32 %v1222_v62, %v1234_v63  ;;  %v631_v2 = vpop.f32.mrb[5].mxu1  ;;  %v1223_v3 = vpop.f32.mrb[6].mxu0 }
  0xf3   : > { %v650_v4 = vmax.f32 %v542_v0, %v631_v2  ;;  %v1235_v5 = vpop.f32.mrb[6].mxu1  ;;  %v545_v6 = vpop.f32.mrb[7].mxu0 }
  0xf4   : > { %v653_v7 = vmax.f32 %v1223_v3, %v1235_v5  ;;  %v634_v8 = vpop.f32.mrb[7].mxu1 }
  0xf5   : > { %v651_v9 = vmax.f32 %v545_v6, %v634_v8 }
  0xf8   : > { %v1242_v10 = vpop.f32.mrb[8].mxu0 }
  0xf9   : > { %v745_v11 = vmax.f32 %v648_v53, %v1242_v10  ;;  %v1254_v12 = vpop.f32.mrb[8].mxu1  ;;  %v712_v13 = vpop.f32.mrb[9].mxu0 }
  0xfa   : > { %v743_v14 = vmax.f32 %v646_v56, %v712_v13  ;;  %v809_v15 = vpop.f32.mrb[9].mxu1  ;;  %v1243_v16 = vpop.f32.mrb[10].mxu0 }
  0xfb   : > { %v842_v18 = vmax.f32 %v745_v11, %v1254_v12  ;;  %v746_v19 = vmax.f32 %v649_v59, %v1243_v16  ;;  %v1255_v20 = vpop.f32.mrb[10].mxu1  ;;  %v715_v21 = vpop.f32.mrb[11].mxu0 }
  0xfc   : > { %v840_v22 = vmax.f32 %v743_v14, %v809_v15  ;;  %v744_v23 = vmax.f32 %v647_v61, %v715_v21  ;;  %v812_v24 = vpop.f32.mrb[11].mxu1 }
  0xfd   : > { %v843_v25 = vmax.f32 %v746_v19, %v1255_v20  ;;  %v857_v26 = vadd.f32 %v1163_v17, %v842_v18 }
  0xfe   : > { %v841_v27 = vmax.f32 %v744_v23, %v812_v24  ;;  %v855_v28 = vadd.f32 %v1163_v17, %v840_v22 }
  0xff   : > { %v858_v29 = vadd.f32 %v1163_v17, %v843_v25  ;;  %v1182_v30 = vpack.c.bf16 %v857_v26, %v857_v26 }
 0x100   : > { %v856_v31 = vadd.f32 %v1163_v17, %v841_v27  ;;  %v1246_v32 = vpop.f32.mrb[12].mxu0  ;;  %v1180_v33 = vpack.c.bf16 %v855_v28, %v855_v28 }
 0x101   : > { %v1183_v34 = vpack.c.bf16 %v858_v29, %v858_v29  ;;  %v749_v35 = vmax.f32 %v652_v1, %v1246_v32  ;;  %v1258_v36 = vpop.f32.mrb[12].mxu1  ;;  %908 = vrot.lane.b32.xlu1 %v1182_v30, %s1311_s9  ;;  %898 = vst.msk [vmem:[%s1462_s8 + $0x8] sm:$0xf] %vm895_vm1, %v1182_v30  ;;  %v728_v37 = vpop.f32.mrb[13].mxu0 }
 0x102   : > { %v1181_v38 = vpack.c.bf16 %v856_v31, %v856_v31  ;;  %v825_v39 = vpop.f32.mrb[13].mxu1  ;;  %v747_v40 = vmax.f32 %v650_v4, %v728_v37  ;;  %904 = vrot.lane.b32.xlu0 %v1180_v33, %s1311_s9  ;;  %896 = vst.msk [vmem:[%s1462_s8] sm:$0xf] %vm895_vm1, %v1180_v33  ;;  %v1247_v41 = vpop.f32.mrb[14].mxu0 }
 0x103   : > { %899 = vst.msk [vmem:[%s1462_s8 + $0xc] sm:$0xf] %vm895_vm1, %v1183_v34  ;;  %v846_v42 = vmax.f32 %v749_v35, %v1258_v36  ;;  %v1259_v43 = vpop.f32.mrb[14].mxu1  ;;  %v750_v44 = vmax.f32 %v653_v7, %v1247_v41  ;;  %v731_v45 = vpop.f32.mrb[15].mxu0 }
 0x104   : > { %897 = vst.msk [vmem:[%s1462_s8 + $0x4] sm:$0xf] %vm895_vm1, %v1181_v38  ;;  %v844_v46 = vmax.f32 %v747_v40, %v825_v39  ;;  %v748_v47 = vmax.f32 %v651_v9, %v731_v45  ;;  %v828_v48 = vpop.f32.mrb[15].mxu1 }
 0x105   : > { %v861_v49 = vadd.f32 %v1163_v17, %v846_v42  ;;  %v847_v50 = vmax.f32 %v750_v44, %v1259_v43  ;;  %910 = vrot.lane.b32.xlu1 %v1183_v34, %s1311_s9 }
 0x106   : > { %v845_v51 = vmax.f32 %v748_v47, %v828_v48  ;;  %906 = vrot.lane.b32.xlu0 %v1181_v38, %s1311_s9  ;;  %v859_v52 = vadd.f32 %v1163_v17, %v844_v46 }
 0x107   : > { %v1186_v53 = vpack.c.bf16 %v861_v49, %v861_v49  ;;  %v862_v54 = vadd.f32 %v1163_v17, %v847_v50 }
 0x108   : > { %v860_v55 = vadd.f32 %v1163_v17, %v845_v51  ;;  %v1184_v56 = vpack.c.bf16 %v859_v52, %v859_v52 }
 0x109   : > { %902 = vst.msk [vmem:[%s1462_s8 + $0x18] sm:$0xf] %vm895_vm1, %v1186_v53  ;;  %v1187_v57 = vpack.c.bf16 %v862_v54, %v862_v54 }
 0x10a   : > { %v1185_v58 = vpack.c.bf16 %v860_v55, %v860_v55  ;;  %912 = vrot.lane.b32.xlu0 %v1184_v56, %s1311_s9  ;;  %900 = vst.msk [vmem:[%s1462_s8 + $0x10] sm:$0xf] %vm895_vm1, %v1184_v56 }
 0x10b   : > { %903 = vst.msk [vmem:[%s1462_s8 + $0x1c] sm:$0xf] %vm895_vm1, %v1187_v57 }
 0x10c   : > { %901 = vst.msk [vmem:[%s1462_s8 + $0x14] sm:$0xf] %vm895_vm1, %v1185_v58  ;;  %914 = vrot.lane.b32.xlu1 %v1185_v58, %s1311_s9 }
 0x10e   : > { %916 = vrot.lane.b32.xlu0 %v1186_v53, %s1311_s9 }
 0x110   : > { %918 = vrot.lane.b32.xlu1 %v1187_v57, %s1311_s9 }
 0x173   : > { %v909_v59 = vpop.permute.xlu1 %908 }
 0x174   : > { %931 = vst.msk [vmem:[%s448_s12 + $0x8] sm:$0xf] %vm928_vm2, %v909_v59  ;;  %v905_v60 = vpop.permute.xlu0 %904 }
 0x175   : > { %929 = vst.msk [vmem:[%s448_s12] sm:$0xf] %vm928_vm2, %v905_v60 }
 0x177   : > { %v911_v61 = vpop.permute.xlu1 %910 }
 0x178   : > { %932 = vst.msk [vmem:[%s448_s12 + $0xc] sm:$0xf] %vm928_vm2, %v911_v61  ;;  %v907_v62 = vpop.permute.xlu0 %906 }
 0x179   : > { %930 = vst.msk [vmem:[%s448_s12 + $0x4] sm:$0xf] %vm928_vm2, %v907_v62 }
 0x17c   : > { %v913_v63 = vpop.permute.xlu0 %912 }
 0x17d   : > { %933 = vst.msk [vmem:[%s448_s12 + $0x10] sm:$0xf] %vm928_vm2, %v913_v63 }
 0x17e   : > { %v915_v0 = vpop.permute.xlu1 %914 }
 0x17f   : > { %934 = vst.msk [vmem:[%s448_s12 + $0x14] sm:$0xf] %vm928_vm2, %v915_v0 }
 0x180   : > { %v917_v1 = vpop.permute.xlu0 %916 }
 0x181   : > { %935 = vst.msk [vmem:[%s448_s12 + $0x18] sm:$0xf] %vm928_vm2, %v917_v1 }
 0x182   : > { %v919_v2 = vpop.permute.xlu1 %918 }
 0x183   : > { %936 = vst.msk [vmem:[%s448_s12 + $0x1c] sm:$0xf] %vm928_vm2, %v919_v2 }
 0x184 PF: > { %s18_s26 = sadd.s32 1, %s1309_s26   ;;  %s1518_s24 = smov %s1305_s25 }
 0x185   : > { %p15_p5 = scmp.ge.s32.totalorder %s18_s26, 4   ;;  %s1519_s25 = smov %s1521_s27 }
 0x187   :  { %17 = sbr.rel (!%p15_p5) target bundleno = 2 (0x2), region = 95 }

</bundles_post_ra>
